<compile_context>
chip_gen: v5e
topology: v5e:2x2
jax: 0.10.0
libtpu: 0.0.40
codegen_flags: <defaults>
</compile_context>

<pallas_src>
import math

import jax
import jax.numpy as jnp
from jax.experimental import pallas as pl
from jax.experimental.pallas import tpu as pltpu


def _round_up(a, b):
    return ((a + b - 1) // b) * b


def _vmem_capacity_bytes():
    try:
        info = pltpu.get_tpu_info()
        cap = int(getattr(info, "vmem_capacity_bytes", 0))
        if cap > 0:
            return cap
    except Exception:
        pass
    return 64 << 20   # conservative: v7x per-TC VMEM; v5e/v6e have 128 MiB


def make_label_smoothing_loss(size, padding_idx=0, smoothing=0.0,
                              tile_m=None, tile_c=None, block_bytes=None):
    """Returns loss_fn(x, target) computing the label-smoothed KLDiv (sum) loss."""
    assert size > 2, "smoothing / (size - 2) requires size > 2"
    confidence = float(1.0 - smoothing)
    smooth_val = float(smoothing) / float(size - 2)

    # Analytic entropy term per non-padded row: sum_c xlogy(td, td)
    #   = conf*ln(conf) + (size-2)*sv*ln(sv)   (padding column contributes 0).
    row_entropy = 0.0
    if confidence > 0.0:
        row_entropy += confidence * math.log(confidence)
    if smooth_val > 0.0:
        row_entropy += (size - 2) * smooth_val * math.log(smooth_val)
    row_entropy = float(row_entropy)

    def loss_fn(x, target):
        N, C = x.shape
        assert C == size, "x.shape[1] must equal `size`"
        itemsize = jnp.dtype(x.dtype).itemsize
        sub = 16 if itemsize == 2 else 8          # bf16 packs 2 rows per sublane

        vmem_cap = _vmem_capacity_bytes()
        bb = block_bytes if block_bytes is not None else min(16 << 20, vmem_cap // 5)

        # ---- tile selection: lane-multiple class tiles, row tiles sized so the
        # ---- x block is ~bb bytes (HBM-bound => big rectangular DMAs).
        if tile_c is None:
            tc = min(_round_up(C, 128), 2048)
        else:
            tc = min(_round_up(tile_c, 128), _round_up(C, 128))
        if tile_m is None:
            tm = max(sub, (bb // (tc * itemsize)) // sub * sub)
        else:
            tm = _round_up(tile_m, sub)
        tm = min(tm, _round_up(N, sub))

        nti, ntj = pl.cdiv(N, tm), pl.cdiv(C, tc)
        # Guarantee >= 2 grid steps (v7x megacore sharding + pipelining).
        if nti * ntj < 2:
            if N > sub:
                tm = _round_up(pl.cdiv(N, 2), sub)
            elif C > 128:
                tc = _round_up(pl.cdiv(C, 2), 128)
            nti, ntj = pl.cdiv(N, tm), pl.cdiv(C, tc)

        ragged_c = (C % tc) != 0
        j_pad, p_loc = padding_idx // tc, padding_idx % tc

        # Only the tiny target vector is padded (rows beyond N get padding_idx,
        # so they are masked in-kernel); x is streamed unpadded, ragged edge
        # tiles handled with selects inside the kernel.
        tgt = target.reshape(-1).astype(jnp.int32)
        n_rows = nti * tm
        if n_rows != N:
            tgt = jnp.pad(tgt, (0, n_rows - N), constant_values=padding_idx)
        tgt = tgt.reshape(n_rows, 1)

        def kernel(x_ref, t_ref, out_ref):
            j = pl.program_id(1)
            xb = x_ref[...]                                  # (tm, tc), input dtype
            tb = t_ref[...]                                  # (tm, 1) int32
            zero = jnp.zeros((), xb.dtype)

            col = jax.lax.broadcasted_iota(jnp.int32, (tm, tc), 1)
            tb_local = tb - j * tc                           # shift target, not iota

            # Confidence (one-hot) term: x[n, target[n]] if target falls in tile.
            onehot = jnp.where(col == tb_local, xb, zero)
            t_term = jnp.sum(onehot, axis=1, keepdims=True).astype(jnp.float32)

            cross = (confidence - smooth_val) * t_term       # (tm, 1) f32

            if smooth_val != 0.0:
                # Smooth term: sv * rowsum(x) over in-bounds columns only (the
                # OOB region of a ragged last tile holds stale VMEM -> select).
                if ragged_c:
                    xs = jnp.where(col < (C - j * tc), xb, zero)
                else:
                    xs = xb
                s_term = jnp.sum(xs.astype(jnp.float32), axis=1, keepdims=True)
                # Padding-column correction: td[:, padding_idx] == 0, so subtract
                # sv * x[:, padding_idx] only in the tile holding that column
                # (one (tm,1) column slice; no full-block compare/select).
                pad_col = xb[:, p_loc:p_loc + 1].astype(jnp.float32)
                pad_term = jnp.where(j == j_pad, pad_col, 0.0)
                cross = cross + smooth_val * (s_term - pad_term)

            # Rows with target == padding_idx (including padded-out OOB rows) are
            # zeroed with a select so stale NaN/Inf bytes cannot poison the sum.
            valid = tb != padding_idx                        # (tm, 1) bool
            cross = jnp.where(valid, cross, 0.0)
            partial = -jnp.sum(cross)

            if row_entropy != 0.0:
                # Analytic sum_c xlogy(td, td): added once per row tile (j == 0).
                n_valid = jnp.sum(jnp.where(valid, 1.0, 0.0))
                partial = partial + jnp.where(j == 0, n_valid * row_entropy, 0.0)

            out_ref[...] = jnp.full((1, 1, 1, 128), partial, dtype=jnp.float32)

        x_block_bytes = tm * tc * itemsize
        # Double-buffered x blocks + small target/output blocks + slack; ceiling
        # adapts to physical VMEM (56 MiB on 64 MiB parts, ~100 MiB on 128 MiB).
        vmem_ceiling = min(max(vmem_cap - (8 << 20), 32 << 20), 100 << 20)
        vmem_limit = int(min(max(3 * x_block_bytes + (4 << 20), 32 << 20),
                             vmem_ceiling))

        partials = pl.pallas_call(
            kernel,
            out_shape=jax.ShapeDtypeStruct((nti, ntj, 1, 128), jnp.float32),
            grid_spec=pltpu.PrefetchScalarGridSpec(
                num_scalar_prefetch=0,
                grid=(nti, ntj),          # j innermost: target block (i,0) reused
                in_specs=[
                    pl.BlockSpec((tm, tc), lambda i, j: (i, j)),
                    pl.BlockSpec((tm, 1), lambda i, j: (i, 0)),
                ],
                out_specs=pl.BlockSpec((1, 1, 1, 128),
                                       lambda i, j: (i, j, 0, 0)),
            ),
            compiler_params=pltpu.CompilerParams(
                dimension_semantics=("parallel", "parallel"),
                vmem_limit_bytes=vmem_limit,
            ),
        )(x, tgt)
        return jnp.sum(partials[:, :, 0, 0])

    return loss_fn


def reference_loss(x, target, size, padding_idx, smoothing):
    """Pure-JAX reference mirroring the PyTorch forward."""
    confidence = 1.0 - smoothing
    N, C = x.shape
    col = jnp.arange(C)[None, :]
    t = target[:, None]
    td = jnp.where(col == t, confidence, smoothing / (size - 2))
    td = jnp.where(col == padding_idx, 0.0, td)
    td = jnp.where(t == padding_idx, 0.0, td)
    kl = jnp.where(td > 0, td * jnp.log(jnp.where(td > 0, td, 1.0)), 0.0) - td * x
    return jnp.sum(kl)


if __name__ == "__main__":
    # N examples, C = vocab `size`; deliberately non-multiples of the tile sizes
    # to exercise the ragged-tile masking path (no wrapper padding of x).
    N, C = 100, 1000
    padding_idx = 0
    smoothing = 0.1

    key = jax.random.PRNGKey(0)
    k_logits, k_tgt, k_logits2, k_tgt2 = jax.random.split(key, 4)
    logits = jax.random.normal(k_logits, (N, C), dtype=jnp.float32)
    x = jax.nn.log_softmax(logits, axis=-1)          # KLDivLoss expects log-probs
    target = jax.random.randint(k_tgt, (N,), 0, C, dtype=jnp.int32)
    # Make sure some rows hit the padding index (exercise row-zeroing path).
    target = target.at[0].set(padding_idx).at[7].set(padding_idx)

    # Explicit small tiles: 4 x 4 grid with ragged last row/column tiles.
    loss_small = make_label_smoothing_loss(C, padding_idx, smoothing,
                                           tile_m=32, tile_c=256)
    # Auto tiles: production path (large HBM-friendly blocks, >= 2 grid steps).
    loss_auto = make_label_smoothing_loss(C, padding_idx, smoothing)
    # No-smoothing path (smooth/entropy terms statically elided in-kernel).
    loss_nosm = make_label_smoothing_loss(C, padding_idx, 0.0)

    ref = reference_loss(x, target, C, padding_idx, smoothing)
    ref0 = reference_loss(x, target, C, padding_idx, 0.0)

    out1 = loss_small(x, target)
    out2 = loss_auto(x, target)
    out4 = loss_nosm(x, target)
    # bf16 input path (halved HBM traffic; f32 accumulation in-kernel).
    x_bf = x.astype(jnp.bfloat16)
    out3 = loss_auto(x_bf, target)

    # Aligned shapes (no ragged tiles): covers the mask-free fast path.
    N2, C2 = 128, 512
    x2 = jax.nn.log_softmax(
        jax.random.normal(k_logits2, (N2, C2), dtype=jnp.float32), axis=-1)
    target2 = jax.random.randint(k_tgt2, (N2,), 0, C2, dtype=jnp.int32)
    loss_auto2 = make_label_smoothing_loss(C2, padding_idx, smoothing)
    out5 = loss_auto2(x2, target2)
    ref2 = reference_loss(x2, target2, C2, padding_idx, smoothing)

    jax.block_until_ready((out1, out2, out3, out4, out5))

    ref_bf = reference_loss(x_bf.astype(jnp.float32), target, C,
                            padding_idx, smoothing)

    assert jnp.allclose(out1, ref, rtol=1e-5, atol=5e-2), (out1, ref)
    assert jnp.allclose(out2, ref, rtol=1e-5, atol=5e-2), (out2, ref)
    assert jnp.allclose(out4, ref0, rtol=1e-5, atol=5e-2), (out4, ref0)
    assert jnp.allclose(out5, ref2, rtol=1e-5, atol=5e-2), (out5, ref2)
    assert jnp.allclose(out3, ref_bf, rtol=1e-4, atol=1e-1), (out3, ref_bf)

    print("KERNEL_OK")
</pallas_src>

<mosaic_0001>
module attributes {stable_mosaic.version = 11 : i64} {
  func.func @kernel(%arg0: i32, %arg1: i32, %arg2: memref<32x256xf32, #tpu.memory_space<vmem>>, %arg3: memref<32x1xi32, #tpu.memory_space<vmem>>, %arg4: memref<1x1x1x128xf32, #tpu.memory_space<vmem>>) attributes {dimension_semantics = [#tpu.dimension_semantics<parallel>, #tpu.dimension_semantics<parallel>], iteration_bounds = array<i64: 4, 4>, scalar_prefetch = 0 : i64, scratch_operands = 0 : i64, tpu.core_type = #tpu.core_type<tc>, window_params = [{transform_indices = @transform_0, window_bounds = array<i64: 32, 256>}, {transform_indices = @transform_1, window_bounds = array<i64: 32, 1>}, {transform_indices = @transform_2, window_bounds = array<i64: 1, 1, 1, 128>}]} {
    %c0 = arith.constant 0 : index
    %c0_0 = arith.constant 0 : index
    %0 = vector.load %arg2[%c0, %c0_0] : memref<32x256xf32, #tpu.memory_space<vmem>>, vector<32x256xf32>
    %c0_1 = arith.constant 0 : index
    %c0_2 = arith.constant 0 : index
    %1 = vector.load %arg3[%c0_1, %c0_2] : memref<32x1xi32, #tpu.memory_space<vmem>>, vector<32x1xi32>
    %2 = tpu.iota {dimensions = array<i32: 1>} : vector<32x256xi32>
    %c256_i32 = arith.constant 256 : i32
    %3 = arith.muli %arg1, %c256_i32 : i32
    %4 = vector.broadcast %3 : i32 to vector<32x1xi32>
    %5 = arith.subi %1, %4 : vector<32x1xi32>
    %6 = vector.broadcast %5 : vector<32x1xi32> to vector<32x256xi32>
    %7 = arith.cmpi eq, %2, %6 : vector<32x256xi32>
    %cst = arith.constant 0.000000e+00 : f32
    %8 = vector.broadcast %cst : f32 to vector<32x256xf32>
    %9 = arith.select %7, %0, %8 : vector<32x256xi1>, vector<32x256xf32>
    %cst_3 = arith.constant dense<0.000000e+00> : vector<32xf32>
    %10 = vector.multi_reduction <add>, %9, %cst_3 [1] : vector<32x256xf32> to vector<32xf32>
    %11 = vector.shape_cast %10 : vector<32xf32> to vector<32x1xf32>
    %cst_4 = arith.constant 0.89989978 : f32
    %12 = vector.broadcast %cst_4 : f32 to vector<32x1xf32>
    %13 = arith.mulf %12, %11 : vector<32x1xf32>
    %c256_i32_5 = arith.constant 256 : i32
    %14 = arith.muli %arg1, %c256_i32_5 : i32
    %c1000_i32 = arith.constant 1000 : i32
    %15 = arith.subi %c1000_i32, %14 : i32
    %16 = vector.broadcast %15 : i32 to vector<32x256xi32>
    %17 = arith.cmpi slt, %2, %16 : vector<32x256xi32>
    %cst_6 = arith.constant 0.000000e+00 : f32
    %18 = vector.broadcast %cst_6 : f32 to vector<32x256xf32>
    %19 = arith.select %17, %0, %18 : vector<32x256xi1>, vector<32x256xf32>
    %cst_7 = arith.constant dense<0.000000e+00> : vector<32xf32>
    %20 = vector.multi_reduction <add>, %19, %cst_7 [1] : vector<32x256xf32> to vector<32xf32>
    %21 = vector.shape_cast %20 : vector<32xf32> to vector<32x1xf32>
    %22 = vector.extract_strided_slice %0 {offsets = [0, 0], sizes = [32, 1], strides = [1, 1]} : vector<32x256xf32> to vector<32x1xf32>
    %c0_i32 = arith.constant 0 : i32
    %23 = arith.cmpi eq, %arg1, %c0_i32 : i32
    %cst_8 = arith.constant 0.000000e+00 : f32
    %24 = vector.broadcast %cst_8 : f32 to vector<32x1xf32>
    %25 = arith.select %23, %22, %24 : vector<32x1xf32>
    %26 = arith.subf %21, %25 : vector<32x1xf32>
    %cst_9 = arith.constant 1.00200399E-4 : f32
    %27 = vector.broadcast %cst_9 : f32 to vector<32x1xf32>
    %28 = arith.mulf %27, %26 : vector<32x1xf32>
    %29 = arith.addf %13, %28 : vector<32x1xf32>
    %c0_i32_10 = arith.constant 0 : i32
    %30 = vector.broadcast %c0_i32_10 : i32 to vector<32x1xi32>
    %31 = arith.cmpi ne, %1, %30 : vector<32x1xi32>
    %cst_11 = arith.constant 0.000000e+00 : f32
    %32 = vector.broadcast %cst_11 : f32 to vector<32x1xf32>
    %33 = arith.select %31, %29, %32 : vector<32x1xi1>, vector<32x1xf32>
    %34 = vector.shape_cast %33 : vector<32x1xf32> to vector<1x32x1xf32>
    %cst_12 = arith.constant dense<0.000000e+00> : vector<1xf32>
    %35 = vector.multi_reduction <add>, %34, %cst_12 [1, 2] : vector<1x32x1xf32> to vector<1xf32>
    %36 = vector.shape_cast %35 : vector<1xf32> to vector<1x1x1xf32>
    %37 = vector.extract %36[0, 0, 0] : f32 from vector<1x1x1xf32>
    %cst_13 = arith.constant 0.000000e+00 : f32
    %38 = arith.subf %cst_13, %37 : f32
    %cst_14 = arith.constant 1.000000e+00 : f32
    %cst_15 = arith.constant 0.000000e+00 : f32
    %39 = vector.broadcast %cst_14 : f32 to vector<32x1xf32>
    %40 = vector.broadcast %cst_15 : f32 to vector<32x1xf32>
    %41 = arith.select %31, %39, %40 : vector<32x1xi1>, vector<32x1xf32>
    %42 = vector.shape_cast %41 : vector<32x1xf32> to vector<1x32x1xf32>
    %cst_16 = arith.constant dense<0.000000e+00> : vector<1xf32>
    %43 = vector.multi_reduction <add>, %42, %cst_16 [1, 2] : vector<1x32x1xf32> to vector<1xf32>
    %44 = vector.shape_cast %43 : vector<1xf32> to vector<1x1x1xf32>
    %45 = vector.extract %44[0, 0, 0] : f32 from vector<1x1x1xf32>
    %c0_i32_17 = arith.constant 0 : i32
    %46 = arith.cmpi eq, %arg1, %c0_i32_17 : i32
    %cst_18 = arith.constant -1.01565826 : f32
    %47 = arith.mulf %45, %cst_18 : f32
    %cst_19 = arith.constant 0.000000e+00 : f32
    %48 = arith.select %46, %47, %cst_19 : f32
    %49 = arith.addf %38, %48 : f32
    %50 = vector.broadcast %49 : f32 to vector<1x1x1x128xf32>
    %c0_20 = arith.constant 0 : index
    %c0_21 = arith.constant 0 : index
    %c0_22 = arith.constant 0 : index
    %c0_23 = arith.constant 0 : index
    %51 = vector.load %arg4[%c0_20, %c0_21, %c0_22, %c0_23] : memref<1x1x1x128xf32, #tpu.memory_space<vmem>>, vector<1x1x1x128xf32>
    tpu.vector_store %arg4[%c0_20, %c0_21, %c0_22, %c0_23], %50 {strides = array<i32>} : memref<1x1x1x128xf32, #tpu.memory_space<vmem>>, vector<1x1x1x128xf32>,
    return
  }
  func.func @transform_0(%arg0: i32, %arg1: i32) -> (i32, i32) {
    %c0_i32 = arith.constant 0 : i32
    return %arg0, %arg1 : i32, i32
  }
  func.func @transform_1(%arg0: i32, %arg1: i32) -> (i32, i32) {
    %c0_i32 = arith.constant 0 : i32
    %c0_i32_0 = arith.constant 0 : i32
    return %arg0, %c0_i32 : i32, i32
  }
  func.func @transform_2(%arg0: i32, %arg1: i32) -> (i32, i32, i32, i32) {
    %c0_i32 = arith.constant 0 : i32
    %c0_i32_0 = arith.constant 0 : i32
    %c0_i32_1 = arith.constant 0 : i32
    return %arg0, %arg1, %c0_i32, %c0_i32_0 : i32, i32, i32, i32
  }
}

</mosaic_0001>

<bundles_post_ra>
// kernel: tpu_custom_call.1
= control target key start
LH: loop header
LB: loop body
LE: loop exit
PB: predicated region body
PF: predicated region fallthrough
CT: control target
= control target key end

     0   :  { %7 = vsyncpa [#allocation3], 0  ;;  %s1054_s0 = inlined_call_operand.hbm [shape: f32[100,1000], index: 0, kind: input, shape index: {}]   ;;  %s1055_s1 = inlined_call_operand.vmem [shape: s32[128,1], index: 1, kind: input, shape index: {}]   ;;  %s1056_s2 = inlined_call_operand.hbm [shape: f32[4,4,1,128], index: 2, kind: output, shape index: {}]  }
   0x1   :  { %9 = vsyncpa [#allocation3 + $0x1], 0 }
   0x2   :  { %10 = vsyncpa [#allocation4], 0 }
   0x3   :  { %12 = vsyncpa [#allocation4 + $0x1], 0  ;;  %s755_s9 = smov 0   ;;  %s757_s10 = smov 0  }
   0x4   :  { %s759_s11 = smov 0   ;;  %s761_s12 = smov 0  }
   0x5   :  { %s763_s13 = smov 0   ;;  %s765_s14 = smov 0  }
   0x6   :  { %s767_s15 = smov 0   ;;  %s769_s16 = smov 0  }
   0x7 LB: > { %1060 = sst [smem:[#allocation8_spill]] %s728_s15  ;;  %s488_s17 = sadd.s32 4294967295, %s732_s16   ;;  %s732_s16 = sphi %s769_s16, %s18_s16   ;;  %s728_s15 = sphi %s767_s15, %s1074_s15   ;;  %s724_s14 = sphi %s765_s14, %s1079_s14   ;;  %s720_s13 = sphi %s763_s13, %s1072_s13   ;;  %s716_s12 = sphi %s761_s12, %s1078_s12   ;;  %s712_s11 = sphi %s759_s11, %s1077_s11   ;;  %s708_s10 = sphi %s757_s10, %s1076_s10   ;;  %s704_s9 = sphi %s755_s9, %s1075_s9  }
   0x8   : > { %s489_s18 = sadd.s32 4294967294, %s732_s16   ;;  %s27_s19 = sadd.s32 1, %s724_s14 }
   0x9   : > { %p28_p0 = scmp.ge.s32.totalorder %s27_s19, 4  ;;  %s30_s20 = sadd.s32 1, %s728_s15 }
   0xa   : > { %p46_p1 = scmp.ne.s32.totalorder %s712_s11, %s708_s10  ;;  %p47_p2 = scmp.eq.s32.totalorder %s732_s16, 0 }
   0xb   : > { %s1081_s19 = smov (%p28_p0, %s27_s19), 0  ;;  %s1083_s20 = smov (!%p28_p0, %s30_s20), %s728_s15 }
   0xc   : > { %1061 = sst [smem:[#allocation9_spill]] %s1081_s19  ;;  %s35_s21 = ssub.s32 %s724_s14, %s1081_s19 }
   0xd   : > { %p807_p3 = por %p47_p2, %p46_p1  ;;  %p32_p4 = scmp.ge.s32.totalorder %s1083_s20, 4 }
   0xe   : > { %p52_p5 = scmp.ne.s32.totalorder %s708_s10, %s704_s9  ;;  %p53_p6 = scmp.eq.s32.totalorder %s488_s17, 0 }
   0xf   : > { %p104_p7 = scmp.eq.s32.totalorder %s488_s17, 15  ;;  %s1085_s20 = smov (%p32_p4, %s1083_s20), 0 }
  0x10   : > { %1063 = sst [smem:[#allocation10_spill]] %s1085_s20  ;;  %p815_p8 = por %p53_p6, %p52_p5 }
  0x11   : > { %p819_p9 = por %p104_p7, %p46_p1  ;;  %s34_s25 = ssub.s32 %s728_s15, %s1085_s20 }
  0x12   : > { %p110_p10 = scmp.eq.s32.totalorder %s489_s18, 15  ;;  %s36_s26 = sor.u32 %s35_s21, %s34_s25 }
  0x13   : > { %s39_s27 = sadd.s32 1, %s712_s11  ;;  %p37_p11 = scmp.eq.s32.totalorder %s36_s26, 0 }
  0x14   : > { %p826_p12 = por %p110_p10, %p52_p5  ;;  %p491_p13 = scmp.ge.s32.totalorder %s732_s16, 16 }
  0x15   : > { %s831_s29 = scalar_select %p37_p11, %s712_s11, %s39_s27  }
  0x16   : > { %126 = sbr.rel (%p491_p13) target bundleno = 66 (0x42), region = 16 }
  0x1b   : > { %129 = sbr.rel (!%p807_p3) target bundleno = 66 (0x42), region = 20  ;;  %s130_s30 = sand.u32 (%p807_p3), 1, %s712_s11  }
  0x1c   : > { %s493_s3 = sshll.u32 (%p807_p3), %s728_s15, 2  ;;  %s492_s4 = sshll.u32 (%p807_p3), %s130_s30, 6 }
  0x1d   : > { %s494_s5 = sshll.u32 (%p807_p3), %s724_s14, 1  ;;  %s137_s6 = ssub.s32 (%p807_p3), 13, %s493_s3 }
  0x1e   : > { %p138_p0 = scmp.lt.s32.totalorder (%p807_p3), %s137_s6, 4  ;;  %s842_s18 = scalar_lea.sflag (%p807_p3), [#allocation3], %s130_s30 }
  0x1f   : > { %s134_s21 = scalar_lea.vmem (%p807_p3), [#allocation2], %s492_s4 }
  0x20   : > { %s1087_s6 = smov (!%p138_p0, %s137_s6), 4 }
  0x21   : > { %s510_s7 = sshll.u32 %s1087_s6, 4 }
  0x22   : > { %s142_s8 = ssub.s32 64, %s510_s7 }
  0x23   : > { %s143_s17 = sshll.u32 %s142_s8, 4 }
  0x24   : > { %144 = vsyncadd %s842_s18, %s143_s17  ;;  %p845_p1 = scmp.ne.s32.totalorder %s510_s7, 0  ;;  %s511_s25 = sshll.u32 %s728_s15, 5 }
  0x25   : > { %s147_s26 = sadd.s32 %s511_s25, %s494_s5  ;;  %s850_s27 = sshll.u32 %s134_s21, 4  ;;  %s154_s27 = int_to_ptr.vmem [resolvable:$true] %s850_s27 }
  0x26   : > { %s499_s3 = sshll.u32 %s147_s26, 3  ;;  %s501_s17 = sshll.u32 %s1087_s6, 8 }
  0x27   : > { %s149_s4 = scalar_lea.hbm %s1054_s0, %s499_s3  ;;  %s597_s19 = sshrl.u32 %s501_s17, 4 }
  0x28   : > { %s151_s20 = sshll.u32 %s149_s4, 4  ;;  %s606_s25 = scalar_lea.hbm %s1054_s0, 832  ;;  %s857_s20 = int_to_ptr.hbm [resolvable:$true] %s151_s20 }
  0x29   : > { %s595_s7 = sshra.s32 %s857_s20, 4  ;;  %s596_s7 = int_to_ptr.hbm [resolvable:$true] %s595_s7 }
  0x2a   : > { %s602_s15 = scalar_lea.hbm %s596_s7, %s597_s19 }
  0x2b   : > { %p603_p2 = scmp.ne.s32.totalorder %s596_s7, %s602_s15  ;;  %p608_p5 = scmp.lt.s32.totalorder %s606_s25, %s602_s15 }
  0x2d   : > { %p604_p3 = pnand %p603_p2, %p845_p1 }
  0x2f   : > { %p605_p4 = pneg %p604_p3 }
  0x31   : > { %p610_p6 = pnand %p608_p5, %p605_p4 }
  0x33   : > { %613 = shalt.err (!%p610_p6)
}
  0x34   : > { %s614_s26 = sshra.s32 %s154_s27, 4  ;;  %s734_s30 = smov [#allocation2]   ;;  %s615_s26 = int_to_ptr.vmem [resolvable:$true] %s614_s26 }
  0x35   : > { %s621_s3 = scalar_lea.vmem %s615_s26, %s597_s19  ;;  %s625_s8 = scalar_lea.vmem %s734_s30, 128 }
  0x36   : > { %p622_p7 = scmp.ne.s32.totalorder %s615_s26, %s621_s3  ;;  %p627_p13 = scmp.lt.s32.totalorder %s625_s8, %s621_s3 }
  0x38   : > { %p623_p10 = pnand %p622_p7, %p845_p1 }
  0x3a   : > { %p624_p11 = pneg %p623_p10 }
  0x3c   : > { %p629_p0 = pnand %p627_p13, %p624_p11 }
  0x3e   : > { %632 = shalt.err (!%p629_p0)
}
  0x3f   : > { %s735_s4 = smov 1024   ;;  %s736_s15 = smov 256  }
  0x40   : > { %s737_s7 = smov 16  }
  0x41   : > { %159 = dma.hbm_to_vmem [thread:$0]  (%p845_p1), %s857_s20, %s501_s17, %s154_s27, %s842_s18, %s735_s4, %s736_s15, %s737_s7  }
  0x42 PF: > { %p502_p2 = scmp.ge.s32.totalorder %s732_s16, 1  ;;  %p170_p3 = scmp.lt.s32.totalorder %s732_s16, 17 }
  0x44   : > { %p171_p4 = pnand %p502_p2, %p170_p3 }
  0x45   : > { %s882_s19 = sand.u32 (!%p171_p4), 1, %s708_s10  }
  0x46   : > { %174 = sbr.rel (%p171_p4) target bundleno = 536 (0x218), region = 28  ;;  %s503_s5 = sshll.u32 (!%p171_p4), %s882_s19, 6 }
  0x47   : > { %s177_s21 = scalar_lea.sflag (!%p171_p4), [#allocation3], %s882_s19  ;;  %s886_s22 = scalar_lea.vmem (!%p171_p4), [#allocation2], %s503_s5 }
  0x4b   : > { %695 = dma.done.wait (%p815_p8), %s177_s21, 1024  }
  0x4c   : > { %697 = vsyncadd (%p815_p8), %s177_s21, 4294966272  ;;  %s893_s20 = sshll.u32 %s720_s13, 2  ;;  %s506_s6 = sshll.u32 %s716_s12, 8  ;;  %v231_v0 = vlaneseq  ;;  %v738_v1 = vmov 0   ;;  %v923_v12 = vld [vmem:[%s886_s22] sm:$0xff]  ;;  %v220_v13 = vld [vmem:[%s886_s22 + $0x8] sm:$0xff] }
  0x4d   : > { %594 = vset.pattern.permute.xlu1 %v738_v1  ;;  %593 = vset.pattern.permute.xlu0 %v738_v1  ;;  %p214_p1 = scmp.lt.s32.totalorder %s893_s20, 15  ;;  %s284_s18 = ssub.s32 1000, %s506_s6  ;;  %v235_v5 = vstv %s506_s6  ;;  %v936_v19 = vld [vmem:[%s886_s22 + $0x10] sm:$0xff]  ;;  %v222_v20 = vld [vmem:[%s886_s22 + $0x18] sm:$0xff]  ;;  %v947_v26 = vld [vmem:[%s886_s22 + $0x20] sm:$0xff]  ;;  %v739_v55 = vmov 0.0  }
  0x4e   : > { %v897_v2 = vand.u32 127, %v231_v0  ;;  %v285_v4 = vstv %s284_s18  ;;  %v224_v27 = vld [vmem:[%s886_s22 + $0x28] sm:$0xff]  ;;  %v956_v31 = vld [vmem:[%s886_s22 + $0x30] sm:$0xff]  ;;  %v226_v32 = vld [vmem:[%s886_s22 + $0x38] sm:$0xff]  ;;  %p308_p8 = scmp.eq.s32.totalorder %s716_s12, 0  ;;  %vm336_vm13 = vcmask 7168   ;;  %s389_s3 = sadd.s32 %s716_s12, %s893_s20 }
  0x4f   : > { %s215_s27 = scalar_select %p214_p1, %s893_s20, 15 }
  0x50   : > { %v901_v3 = vadd.s32 128, %v897_v2  ;;  %vm911_vm0 = vcmp.lt.s32.totalorder %v897_v2, %v285_v4  ;;  %s309_s26 = scalar_select %p308_p8, 1, 0 }
  0x51   : > { %s505_s13 = sshll.u32 %s215_s27, 3  ;;  %v288_v15 = vsel %vm911_vm0, %v923_v12, 0.0  ;;  %v290_v23 = vsel %vm911_vm0, %v936_v19, 0.0  ;;  %v292_v28 = vsel %vm911_vm0, %v947_v26, 0.0  ;;  %v294_v33 = vsel %vm911_vm0, %v956_v31, 0.0  ;;  %s390_s15 = scalar_lea.hbm %s1056_s2, %s389_s3 }
  0x52   : > { %s217_s25 = scalar_lea.vmem %s1055_s1, %s505_s13  ;;  %vm916_vm1 = vcmp.lt.s32.totalorder %v901_v3, %v285_v4  ;;  %v310_v0 = vstv %s309_s26  ;;  %s205_s21 = scalar_lea.vmem [#allocation5], %s882_s19 }
  0x53   : > { %v906_v6 = vld [vmem:[%s217_s25 + $0x10] sm:$0xff]  ;;  %v908_v7 = vld [vmem:[%s217_s25] sm:$0xff]  ;;  %v926_v14 = vld [vmem:[%s217_s25 + $0x18] sm:$0xff]  ;;  %v289_v16 = vsel %vm916_vm1, %v220_v13, 0.0  ;;  %v291_v24 = vsel %vm916_vm1, %v222_v20, 0.0  ;;  %v293_v29 = vsel %vm916_vm1, %v224_v27, 0.0 }
  0x54   : > { %v238_v10 = vsub.s32 %v906_v6, %v235_v5  ;;  %v236_v11 = vsub.s32 %v908_v7, %v235_v5  ;;  %v933_v17 = vld [vmem:[%s217_s25 + $0x8] sm:$0xff]  ;;  %v296_v18 = vadd.f32 %v289_v16, %v288_v15  ;;  %v239_v21 = vsub.s32 %v926_v14, %v235_v5  ;;  %s392_s22 = sshll.u32 %s205_s21, 4  ;;  %s394_s18 = sshll.u32 %s390_s15, 4  ;;  %s393_s22 = int_to_ptr.vmem [resolvable:$true] %s392_s22  ;;  %s395_s18 = int_to_ptr.hbm [resolvable:$true] %s394_s18 }
  0x55   : > { %v237_v22 = vsub.s32 %v933_v17, %v235_v5  ;;  %v299_v25 = vadd.f32 %v291_v24, %v290_v23  ;;  %v302_v30 = vadd.f32 %v293_v29, %v292_v28  ;;  %v295_v34 = vsel %vm916_vm1, %v226_v32, 0.0  ;;  %s380_s20 = scalar_lea.sflag [#allocation4], %s882_s19  ;;  %s648_s13 = sshra.s32 %s395_s18, 4  ;;  %s649_s13 = int_to_ptr.hbm [resolvable:$true] %s648_s13 }
  0x56   : > { %247 = vperm.xlu1 %594, %v238_v10   ;;  %241 = vperm.xlu0 %593, %v236_v11   ;;  %v305_v35 = vadd.f32 %v295_v34, %v294_v33  ;;  %vm328_vm10 = vcmp.ne.s32.totalorder %v908_v7, 0  ;;  %vm330_vm11 = vcmp.ne.s32.totalorder %v906_v6, 0  ;;  %vm329_vm12 = vcmp.ne.s32.totalorder %v933_v17, 0  ;;  %s650_s23 = scalar_lea.hbm %s649_s13, 1  ;;  %s654_s26 = scalar_lea.hbm %s1056_s2, 16 }
  0x57   : > { %297 = vadd.xlane.f32.xlu2 %v296_v18  ;;  %v354_v56 = vsel %vm328_vm10, 1.0, %v739_v55  ;;  %v356_v57 = vsel %vm330_vm11, 1.0, %v739_v55  ;;  %v355_v58 = vsel %vm329_vm12, 1.0, %v739_v55  ;;  %vm311_vm14 = vcmp.eq.s32.totalorder %v310_v0, 1  ;;  %p651_p5 = scmp.ne.s32.totalorder %s649_s13, %s650_s23  ;;  %p655_p10 = scmp.lt.s32.totalorder %s649_s13, %s1056_s2 }
  0x58   : > { %v358_v59 = vsel %vm336_vm13, %v354_v56, 0.0  ;;  %v359_v60 = vsel %vm336_vm13, %v355_v58, 0.0  ;;  %v361_v61 = vsel %vm336_vm13, %v356_v57, 0.0  ;;  %v313_v9 = vsel %vm311_vm14, %v936_v19, 0.0  ;;  %p656_p11 = scmp.lt.s32.totalorder %s654_s26, %s650_s23 }
  0x59   : > { %v360_v63 = vadd.f32 %v359_v60, %v358_v59  ;;  %v315_v10 = vsel %vm311_vm14, %v956_v31, 0.0  ;;  %vm331_vm15 = vcmp.ne.s32.totalorder %v926_v14, 0  ;;  %p652_p6 = pnand %p651_p5, %p819_p9 }
  0x5a   : > { %p657_p13 = por %p656_p11, %p655_p10 }
  0x5b   : > { %v362_v1 = vadd.f32 %v361_v61, %v360_v63  ;;  %p653_p7 = pneg %p652_p6 }
  0x5d   : > { %p658_p0 = pnand %p657_p13, %p653_p7 }
  0x5e   : > { %250 = vperm.xlu1 %594, %v239_v21   ;;  %244 = vperm.xlu0 %593, %v237_v22  }
  0x5f   : > { %300 = vadd.xlane.f32.xlu2 %v299_v25 }
  0x67   : > { %303 = vadd.xlane.f32.xlu2 %v302_v30 }
  0x6f   : > { %306 = vadd.xlane.f32.xlu2 %v305_v35 }
  0xc8   : > { %v248_v36 = vpop.permute.xlu1 %247  ;;  %v242_v37 = vpop.permute.xlu0 %241 }
  0xc9   : > { %vm256_vm2 = vcmp.eq.s32.totalorder %v897_v2, %v248_v36  ;;  %vm257_vm3 = vcmp.eq.s32.totalorder %v901_v3, %v248_v36  ;;  %vm252_vm4 = vcmp.eq.s32.totalorder %v897_v2, %v242_v37  ;;  %vm253_vm5 = vcmp.eq.s32.totalorder %v901_v3, %v242_v37 }
  0xca   : > { %v264_v38 = vsel %vm256_vm2, %v947_v26, 0.0  ;;  %v265_v39 = vsel %vm257_vm3, %v224_v27, 0.0  ;;  %v260_v40 = vsel %vm252_vm4, %v923_v12, 0.0  ;;  %v261_v41 = vsel %vm253_vm5, %v220_v13, 0.0  ;;  %v298_v52 = vpop.xlane.xlu2 %297 }
  0xcb   : > { %v274_v42 = vadd.f32 %v265_v39, %v264_v38  ;;  %v268_v43 = vadd.f32 %v261_v41, %v260_v40  ;;  %v357_v40 = vsel %vm331_vm15, 1.0, %v739_v55 }
  0xcc   : > { %v363_v6 = vsel %vm336_vm13, %v357_v40, 0.0 }
  0xcd   : > { %275 = vadd.xlane.f32.xlu2 %v274_v42  ;;  %269 = vadd.xlane.f32.xlu0 %v268_v43  ;;  %v364_v14 = vadd.f32 %v363_v6, %v362_v1 }
  0xd0   : > { %v251_v44 = vpop.permute.xlu1 %250  ;;  %v245_v45 = vpop.permute.xlu0 %244 }
  0xd1   : > { %vm258_vm6 = vcmp.eq.s32.totalorder %v897_v2, %v251_v44  ;;  %vm259_vm7 = vcmp.eq.s32.totalorder %v901_v3, %v251_v44  ;;  %vm254_vm8 = vcmp.eq.s32.totalorder %v897_v2, %v245_v45  ;;  %vm255_vm9 = vcmp.eq.s32.totalorder %v901_v3, %v245_v45 }
  0xd2   : > { %v262_v46 = vsel %vm254_vm8, %v936_v19, 0.0  ;;  %v263_v47 = vsel %vm255_vm9, %v222_v20, 0.0  ;;  %v266_v48 = vsel %vm258_vm6, %v956_v31, 0.0  ;;  %v267_v49 = vsel %vm259_vm7, %v226_v32, 0.0  ;;  %v301_v53 = vpop.xlane.xlu2 %300 }
  0xd3   : > { %v271_v50 = vadd.f32 %v263_v47, %v262_v46  ;;  %v277_v51 = vadd.f32 %v267_v49, %v266_v48  ;;  %v312_v2 = vsel %vm311_vm14, %v923_v12, 0.0  ;;  %v314_v3 = vsel %vm311_vm14, %v947_v26, 0.0 }
  0xd4   : > { %v316_v8 = vsub.f32 %v298_v52, %v312_v2  ;;  %v317_v15 = vsub.f32 %v301_v53, %v313_v9 }
  0xd5   : > { %272 = vadd.xlane.f32.xlu1 %v271_v50  ;;  %278 = vadd.xlane.f32.xlu2 %v277_v51 }
  0xd6   : > { %v320_v16 = vmul.f32 0.0001002004, %v316_v8  ;;  %v321_v23 = vmul.f32 0.0001002004, %v317_v15 }
  0xda   : > { %v304_v54 = vpop.xlane.xlu2 %303 }
  0xdb   : > { %v318_v11 = vsub.f32 %v304_v54, %v314_v3 }
  0xdd   : > { %v322_v21 = vmul.f32 0.0001002004, %v318_v11 }
  0xe2   : > { %v307_v62 = vpop.xlane.xlu2 %306 }
  0xe3   : > { %v319_v18 = vsub.f32 %v307_v62, %v315_v10 }
  0xe5   : > { %v323_v25 = vmul.f32 0.0001002004, %v319_v18 }
 0x140   : > { %v276_v4 = vpop.xlane.xlu2 %275  ;;  %v270_v5 = vpop.xlane.xlu0 %269 }
 0x141   : > { %v280_v13 = vmul.f32 0.8998998, %v270_v5  ;;  %v282_v20 = vmul.f32 0.8998998, %v276_v4 }
 0x143   : > { %v324_v22 = vadd.f32 %v320_v16, %v280_v13  ;;  %v326_v26 = vadd.f32 %v322_v21, %v282_v20 }
 0x145   : > { %v332_v19 = vsel %vm328_vm10, %v324_v22, 0.0  ;;  %v334_v31 = vsel %vm330_vm11, %v326_v26, 0.0 }
 0x146   : > { %v337_v33 = vsel %vm336_vm13, %v332_v19, 0.0  ;;  %v340_v37 = vsel %vm336_vm13, %v334_v31, 0.0 }
 0x148   : > { %v273_v24 = vpop.xlane.xlu1 %272  ;;  %v279_v12 = vpop.xlane.xlu2 %278 }
 0x149   : > { %v281_v27 = vmul.f32 0.8998998, %v273_v24  ;;  %v283_v28 = vmul.f32 0.8998998, %v279_v12 }
 0x14b   : > { %v325_v29 = vadd.f32 %v321_v23, %v281_v27  ;;  %v327_v30 = vadd.f32 %v323_v25, %v283_v28 }
 0x14d   : > { %v333_v32 = vsel %vm329_vm12, %v325_v29, 0.0  ;;  %v335_v35 = vsel %vm331_vm15, %v327_v30, 0.0 }
 0x14e   : > { %v338_v34 = vsel %vm336_vm13, %v333_v32, 0.0  ;;  %v342_v38 = vsel %vm336_vm13, %v335_v35, 0.0 }
 0x14f   : > { %v339_v36 = vadd.f32 %v338_v34, %v337_v33 }
 0x151   : > { %v341_v7 = vadd.f32 %v340_v37, %v339_v36 }
 0x153   : > { %v343_v39 = vadd.f32 %v342_v38, %v341_v7 }
 0x155   : > { %344 = vadd.xlane.f32.xlu2 %v343_v39 }
 0x15d   : > { %365 = vadd.xlane.f32.xlu2 %v364_v14 }
 0x1c8   : > { %v345_v17 = vpop.xlane.xlu2 %344 }
 0x1c9   : > { %v346_v41 = vrot.slane %v345_v17, 4 }
 0x1cb   : > { %v347_v42 = vadd.f32 %v346_v41, %v345_v17 }
 0x1cd   : > { %v348_v43 = vrot.slane %v347_v42, 2 }
 0x1cf   : > { %v349_v44 = vadd.f32 %v348_v43, %v347_v42 }
 0x1d0   : > { %v366_v45 = vpop.xlane.xlu2 %365 }
 0x1d1   : > { %v367_v46 = vrot.slane %v366_v45, 4  ;;  %v350_v47 = vrot.slane %v349_v44, 1 }
 0x1d3   : > { %v368_v48 = vadd.f32 %v367_v46, %v366_v45  ;;  %v351_v49 = vadd.f32 %v350_v47, %v349_v44 }
 0x1d5   : > { %v369_v50 = vrot.slane %v368_v48, 2  ;;  %512 = vpush %v351_v49 }
 0x1d7   : > { %v370_v51 = vadd.f32 %v369_v50, %v368_v48 }
 0x1d9   : > { %v371_v52 = vrot.slane %v370_v51, 1 }
 0x1db   : > { %v372_v53 = vadd.f32 %v371_v52, %v370_v51 }
 0x1dd   : > { %514 = vpush %v372_v53 }
 0x206   : > { %s513_s30 = spop %512 }
 0x207   : > { %s353_s6 = ssub.f32 0.0, %s513_s30 }
 0x20e   : > { %s515_s7 = spop %514 }
 0x20f   : > { %s374_s5 = smul.f32 -1.0156583, %s515_s7 }
 0x211   : > { %s1089_s5 = smov (!%p308_p8, %s374_s5), 0.0 }
 0x212   : > { %s376_s27 = sadd.f32 %s1089_s5, %s353_s6 }
 0x214   : > { %v377_v54 = vstv %s376_s27 }
 0x215   : > { %378 = vst [vmem:[%s205_s21] sm:$0x1] %v377_v54 }
 0x216   : > { %661 = shalt.err (!%p658_p0)
}
 0x217   : > { %517 = dma.vmem_to_hbm [thread:$0]  (%p819_p9), %s393_s22, 16, %s395_s18, %s380_s20  }
 0x218 PF: > { %p523_p2 = scmp.ge.s32.totalorder %s732_s16, 2  ;;  %s406_s19 = sand.u32 1, %s704_s9  }
 0x219   : > { %s407_s30 = scalar_lea.sflag [#allocation4], %s406_s19 }
 0x21a   : > { %p520_p3 = pnand %p523_p2, %p826_p12 }
 0x21c   : > { %p521_p4 = pneg %p520_p3 }
 0x21e   : > { %699 = dma.done.wait (%p521_p4), %s407_s30, 16  }
 0x21f   : > { %701 = vsyncadd (%p521_p4), %s407_s30, 4294967280  ;;  %s18_s16 = sadd.s32 1, %s732_s16   ;;  %s1072_s13 = sld [smem:[#allocation8_spill]] }
 0x220   : > { %p15_p1 = scmp.ge.s32.totalorder %s18_s16, 18   ;;  %s1073_s24 = sld [smem:[#allocation9_spill]] }
 0x221   : > { %s1074_s15 = sld [smem:[#allocation10_spill]]  ;;  %s1075_s9 = smov %s708_s10 }
 0x222   : > { %s1076_s10 = smov %s712_s11  ;;  %s1077_s11 = smov %s831_s29 }
 0x223   : > { %s1078_s12 = smov %s724_s14  ;;  %17 = sbr.rel (!%p15_p1) target bundleno = 7 (0x7), region = 76 }
 0x226   : > { %s1079_s14 = smov %s1073_s24 }
 0x228   :  { %412 = vsyncpa [#allocation3], 1 }
 0x229   :  { %414 = vsyncpa [#allocation3 + $0x1], 1 }
 0x22a   :  { %415 = vsyncpa [#allocation4], 1 }
 0x22b   :  { %417 = vsyncpa [#allocation4 + $0x1], 1 }

</bundles_post_ra>
